<compile_context>
chip_gen: v6e
topology: v6e:2x2x1
jax: 0.10.0
libtpu: 0.0.40
codegen_flags: <defaults>
</compile_context>

<pallas_src>
import functools

import jax
import jax.numpy as jnp
from jax.experimental import pallas as pl
from jax.experimental.pallas import tpu as pltpu


def _round_up(x, m):
    return (x + m - 1) // m * m


def _elu(x):
    # F.elu with alpha=1.0.  exp(x)-1 matches PyTorch well within tolerance
    # (expm1 would be marginally more accurate for tiny |x|).
    return jnp.where(x > 0, x, jnp.exp(x) - 1.0)


def _fused_mlp(x_ref, w1_ref, b1_ref, w2_ref, b2_ref):
    """elu(elu(x @ W1 + b1) @ W2 + b2) for one row tile. bf16 MXU, f32 accumulate."""
    x = x_ref[...].astype(jnp.bfloat16)
    h = jnp.dot(x, w1_ref[...], preferred_element_type=jnp.float32) + b1_ref[...]
    h = _elu(h)
    # dropout(p=0.0) in the reference module -> identity (no-op)
    y = jnp.dot(h.astype(jnp.bfloat16), w2_ref[...],
                preferred_element_type=jnp.float32) + b2_ref[...]
    return _elu(y)


def _stats_kernel(x_ref, w1_ref, b1_ref, w2_ref, b2_ref, sum_ref, sumsq_ref,
                  *, m_total, tm):
    """Pass 1: per-tile partial sum and sum-of-squares of y (padded rows masked)."""
    y = _fused_mlp(x_ref, w1_ref, b1_ref, w2_ref, b2_ref)
    row = jax.lax.broadcasted_iota(jnp.int32, (tm, 1), 0) + pl.program_id(0) * tm
    valid = (row < m_total).astype(jnp.float32)
    ys = y * valid
    sum_ref[...] = jnp.sum(ys, axis=0, keepdims=True)[None]
    sumsq_ref[...] = jnp.sum(ys * ys, axis=0, keepdims=True)[None]


def _norm_kernel(x_ref, w1_ref, b1_ref, w2_ref, b2_ref, scale_ref, shift_ref, o_ref):
    """Pass 2: recompute y for the tile and apply the folded BN affine."""
    y = _fused_mlp(x_ref, w1_ref, b1_ref, w2_ref, b2_ref)
    o_ref[...] = y * scale_ref[...] + shift_ref[...]


def mlp_forward(x, w1, b1, w2, b2, gamma, beta, *, tm=512):
    """x: (B, N, n_in) float32. Returns (B, N, n_out) float32."""
    B, N, n_in = x.shape
    n_hid = w1.shape[1]
    n_out = w2.shape[1]
    M = B * N

    n_hid_p = _round_up(n_hid, 128)
    n_out_p = _round_up(n_out, 128)
    tm = max(8, min(tm, _round_up(M, 8)))
    M_pad = _round_up(M, tm)
    num_tiles = M_pad // tm

    x2d = x.reshape(M, n_in)
    if M_pad != M:
        x2d = jnp.pad(x2d, ((0, M_pad - M), (0, 0)))

    # Lane-dense (multiple-of-128) hidden/output features: zero-padded weights,
    # biases and BN params keep the padded columns exact zeros end-to-end.
    w1p = jnp.pad(w1, ((0, 0), (0, n_hid_p - n_hid))).astype(jnp.bfloat16)
    b1p = jnp.pad(b1, (0, n_hid_p - n_hid)).reshape(1, n_hid_p)
    w2p = jnp.pad(w2, ((0, n_hid_p - n_hid), (0, n_out_p - n_out))).astype(jnp.bfloat16)
    b2p = jnp.pad(b2, (0, n_out_p - n_out)).reshape(1, n_out_p)
    gammap = jnp.pad(gamma, (0, n_out_p - n_out)).reshape(1, n_out_p)
    betap = jnp.pad(beta, (0, n_out_p - n_out)).reshape(1, n_out_p)

    x_spec = pl.BlockSpec((tm, n_in), lambda i: (i, 0))
    w1_spec = pl.BlockSpec((n_in, n_hid_p), lambda i: (0, 0))      # resident, no re-DMA
    b1_spec = pl.BlockSpec((1, n_hid_p), lambda i: (0, 0))
    w2_spec = pl.BlockSpec((n_hid_p, n_out_p), lambda i: (0, 0))
    b2_spec = pl.BlockSpec((1, n_out_p), lambda i: (0, 0))
    vec_spec = pl.BlockSpec((1, n_out_p), lambda i: (0, 0))
    params = pltpu.CompilerParams(dimension_semantics=("parallel",))

    # ---- Pass 1: stream row tiles, emit per-tile partial sums ----------------
    sums, sumsqs = pl.pallas_call(
        functools.partial(_stats_kernel, m_total=M, tm=tm),
        out_shape=(jax.ShapeDtypeStruct((num_tiles, 1, n_out_p), jnp.float32),
                   jax.ShapeDtypeStruct((num_tiles, 1, n_out_p), jnp.float32)),
        grid=(num_tiles,),
        in_specs=[x_spec, w1_spec, b1_spec, w2_spec, b2_spec],
        out_specs=(pl.BlockSpec((1, 1, n_out_p), lambda i: (i, 0, 0)),
                   pl.BlockSpec((1, 1, n_out_p), lambda i: (i, 0, 0))),
        compiler_params=params,
    )(x2d, w1p, b1p, w2p, b2p)

    # Tiny reduction + BN constant folding in plain XLA (num_tiles x n_out_p).
    total = jnp.sum(sums, axis=0)          # (1, n_out_p)
    total_sq = jnp.sum(sumsqs, axis=0)     # (1, n_out_p)
    mean = total / M
    var = jnp.maximum(total_sq / M - mean * mean, 0.0)   # biased var (BN training mode)
    scale = gammap * jax.lax.rsqrt(var + jnp.float32(1e-5))
    shift = betap - mean * scale

    # ---- Pass 2: recompute tiles and apply the normalization -----------------
    out_pad = pl.pallas_call(
        _norm_kernel,
        out_shape=jax.ShapeDtypeStruct((M_pad, n_out_p), jnp.float32),
        grid=(num_tiles,),
        in_specs=[x_spec, w1_spec, b1_spec, w2_spec, b2_spec, vec_spec, vec_spec],
        out_specs=pl.BlockSpec((tm, n_out_p), lambda i: (i, 0)),
        compiler_params=params,
    )(x2d, w1p, b1p, w2p, b2p, scale, shift)

    return out_pad[:M, :n_out].reshape(B, N, n_out)


def init_params(key, n_in, n_hid, n_out):
    """Matches the module init: xavier_normal_ weights, bias=0.1, BN gamma=1, beta=0.
    Weights stored transposed ((in, out)) so the kernel computes x @ W == x @ W_pt.T."""
    k1, k2 = jax.random.split(key)
    std1 = (2.0 / (n_in + n_hid)) ** 0.5
    std2 = (2.0 / (n_hid + n_out)) ** 0.5
    w1 = std1 * jax.random.normal(k1, (n_in, n_hid), jnp.float32)
    w2 = std2 * jax.random.normal(k2, (n_hid, n_out), jnp.float32)
    b1 = jnp.full((n_hid,), 0.1, jnp.float32)
    b2 = jnp.full((n_out,), 0.1, jnp.float32)
    gamma = jnp.ones((n_out,), jnp.float32)
    beta = jnp.zeros((n_out,), jnp.float32)
    return w1, b1, w2, b2, gamma, beta


if __name__ == "__main__":
    B, N, n_in, n_hid, n_out = 2, 8, 32, 64, 32

    key = jax.random.PRNGKey(0)
    kx, kp = jax.random.split(key)
    x = jax.random.normal(kx, (B, N, n_in), jnp.float32)
    w1, b1, w2, b2, gamma, beta = init_params(kp, n_in, n_hid, n_out)

    fwd = jax.jit(mlp_forward)
    out = jax.block_until_ready(fwd(x, w1, b1, w2, b2, gamma, beta))

    def elu(v):
        return jnp.where(v > 0, v, jnp.exp(v) - 1.0)

    M = B * N
    x2 = x.reshape(M, n_in)

    # Reference 1: identical math (bf16 matmul operands, f32 accumulation) -> tight.
    h = jnp.dot(x2.astype(jnp.bfloat16), w1.astype(jnp.bfloat16),
                preferred_element_type=jnp.float32) + b1
    h = elu(h)
    y = jnp.dot(h.astype(jnp.bfloat16), w2.astype(jnp.bfloat16),
                preferred_element_type=jnp.float32) + b2
    y = elu(y)
    m_ = y.mean(0, keepdims=True)
    v_ = ((y - m_) ** 2).mean(0, keepdims=True)
    ref_bf16 = (gamma * (y - m_) * jax.lax.rsqrt(v_ + 1e-5) + beta).reshape(B, N, n_out)
    assert jnp.allclose(out, ref_bf16, atol=1e-3, rtol=1e-3), "mismatch vs matched-precision reference"

    # Reference 2: full-f32 semantics of the PyTorch module (loose tolerance: the
    # only deviation is the bf16 matmul operands requested for MXU throughput).
    h32 = elu(x2 @ w1 + b1)
    y32 = elu(h32 @ w2 + b2)
    m32 = y32.mean(0, keepdims=True)
    v32 = ((y32 - m32) ** 2).mean(0, keepdims=True)
    ref_f32 = (gamma * (y32 - m32) / jnp.sqrt(v32 + 1e-5) + beta).reshape(B, N, n_out)
    assert jnp.allclose(out, ref_f32, atol=1e-1, rtol=5e-2), "mismatch vs f32 reference"

    print("KERNEL_OK")
</pallas_src>

<mosaic_0001>
module attributes {stable_mosaic.version = 11 : i64} {
  func.func @_stats_kernel(%arg0: i32, %arg1: memref<16x32xf32, #tpu.memory_space<vmem>>, %arg2: memref<32x128xbf16, #tpu.memory_space<vmem>>, %arg3: memref<1x128xf32, #tpu.memory_space<vmem>>, %arg4: memref<128x128xbf16, #tpu.memory_space<vmem>>, %arg5: memref<1x128xf32, #tpu.memory_space<vmem>>, %arg6: memref<1x1x128xf32, #tpu.memory_space<vmem>>, %arg7: memref<1x1x128xf32, #tpu.memory_space<vmem>>) attributes {dimension_semantics = [#tpu.dimension_semantics<parallel>], iteration_bounds = array<i64: 1>, scalar_prefetch = 0 : i64, scratch_operands = 0 : i64, tpu.core_type = #tpu.core_type<tc>, window_params = [{transform_indices = @transform_0, window_bounds = array<i64: 16, 32>}, {pipeline_mode = #tpu.pipeline_mode<synchronous>, transform_indices = @transform_1, window_bounds = array<i64: 32, 128>}, {pipeline_mode = #tpu.pipeline_mode<synchronous>, transform_indices = @transform_2, window_bounds = array<i64: 1, 128>}, {pipeline_mode = #tpu.pipeline_mode<synchronous>, transform_indices = @transform_3, window_bounds = array<i64: 128, 128>}, {pipeline_mode = #tpu.pipeline_mode<synchronous>, transform_indices = @transform_4, window_bounds = array<i64: 1, 128>}, {transform_indices = @transform_5, window_bounds = array<i64: 1, 1, 128>}, {transform_indices = @transform_6, window_bounds = array<i64: 1, 1, 128>}]} {
    %c0 = arith.constant 0 : index
    %c0_0 = arith.constant 0 : index
    %0 = vector.load %arg1[%c0, %c0_0] : memref<16x32xf32, #tpu.memory_space<vmem>>, vector<16x32xf32>
    %1 = arith.truncf %0 : vector<16x32xf32> to vector<16x32xbf16>
    %c0_1 = arith.constant 0 : index
    %c0_2 = arith.constant 0 : index
    %2 = vector.load %arg2[%c0_1, %c0_2] : memref<32x128xbf16, #tpu.memory_space<vmem>>, vector<32x128xbf16>
    %cst = arith.constant dense<0.000000e+00> : vector<16x128xf32>
    %3 = tpu.matmul %1, %2, %cst {dimension_numbers = #tpu.dot_dimension_numbers<[1], [0], [0], [1], [0, 0, 1, 1], [], []>} : vector<16x32xbf16>, vector<32x128xbf16>, vector<16x128xf32> -> vector<16x128xf32>
    %c0_3 = arith.constant 0 : index
    %c0_4 = arith.constant 0 : index
    %4 = vector.load %arg3[%c0_3, %c0_4] : memref<1x128xf32, #tpu.memory_space<vmem>>, vector<1x128xf32>
    %5 = vector.broadcast %4 : vector<1x128xf32> to vector<16x128xf32>
    %6 = arith.addf %3, %5 : vector<16x128xf32>
    %cst_5 = arith.constant 0.000000e+00 : f32
    %7 = vector.broadcast %cst_5 : f32 to vector<16x128xf32>
    %8 = arith.cmpf ogt, %6, %7 : vector<16x128xf32>
    %9 = math.exp %6 : vector<16x128xf32>
    %cst_6 = arith.constant 1.000000e+00 : f32
    %10 = vector.broadcast %cst_6 : f32 to vector<16x128xf32>
    %11 = arith.subf %9, %10 : vector<16x128xf32>
    %12 = arith.select %8, %6, %11 : vector<16x128xi1>, vector<16x128xf32>
    %13 = arith.truncf %12 : vector<16x128xf32> to vector<16x128xbf16>
    %c0_7 = arith.constant 0 : index
    %c0_8 = arith.constant 0 : index
    %14 = vector.load %arg4[%c0_7, %c0_8] : memref<128x128xbf16, #tpu.memory_space<vmem>>, vector<128x128xbf16>
    %cst_9 = arith.constant dense<0.000000e+00> : vector<16x128xf32>
    %15 = tpu.matmul %13, %14, %cst_9 {dimension_numbers = #tpu.dot_dimension_numbers<[1], [0], [0], [1], [0, 0, 1, 1], [], []>} : vector<16x128xbf16>, vector<128x128xbf16>, vector<16x128xf32> -> vector<16x128xf32>
    %c0_10 = arith.constant 0 : index
    %c0_11 = arith.constant 0 : index
    %16 = vector.load %arg5[%c0_10, %c0_11] : memref<1x128xf32, #tpu.memory_space<vmem>>, vector<1x128xf32>
    %17 = vector.broadcast %16 : vector<1x128xf32> to vector<16x128xf32>
    %18 = arith.addf %15, %17 : vector<16x128xf32>
    %cst_12 = arith.constant 0.000000e+00 : f32
    %19 = vector.broadcast %cst_12 : f32 to vector<16x128xf32>
    %20 = arith.cmpf ogt, %18, %19 : vector<16x128xf32>
    %21 = math.exp %18 : vector<16x128xf32>
    %cst_13 = arith.constant 1.000000e+00 : f32
    %22 = vector.broadcast %cst_13 : f32 to vector<16x128xf32>
    %23 = arith.subf %21, %22 : vector<16x128xf32>
    %24 = arith.select %20, %18, %23 : vector<16x128xi1>, vector<16x128xf32>
    %25 = tpu.iota {dimensions = array<i32: 0>} : vector<16x1xi32>
    %c16_i32 = arith.constant 16 : i32
    %26 = arith.muli %arg0, %c16_i32 : i32
    %27 = vector.broadcast %26 : i32 to vector<16x1xi32>
    %28 = arith.addi %25, %27 : vector<16x1xi32>
    %c16_i32_14 = arith.constant 16 : i32
    %29 = vector.broadcast %c16_i32_14 : i32 to vector<16x1xi32>
    %30 = arith.cmpi slt, %28, %29 : vector<16x1xi32>
    %31 = arith.extui %30 : vector<16x1xi1> to vector<16x1xi32>
    %32 = arith.sitofp %31 : vector<16x1xi32> to vector<16x1xf32>
    %33 = vector.broadcast %32 : vector<16x1xf32> to vector<16x128xf32>
    %34 = arith.mulf %24, %33 : vector<16x128xf32>
    %cst_15 = arith.constant dense<0.000000e+00> : vector<128xf32>
    %35 = vector.multi_reduction <add>, %34, %cst_15 [0] : vector<16x128xf32> to vector<128xf32>
    %36 = vector.shape_cast %35 : vector<128xf32> to vector<1x128xf32>
    %37 = vector.shape_cast %36 : vector<1x128xf32> to vector<1x1x128xf32>
    %c0_16 = arith.constant 0 : index
    %c0_17 = arith.constant 0 : index
    %c0_18 = arith.constant 0 : index
    %38 = vector.load %arg6[%c0_16, %c0_17, %c0_18] : memref<1x1x128xf32, #tpu.memory_space<vmem>>, vector<1x1x128xf32>
    tpu.vector_store %arg6[%c0_16, %c0_17, %c0_18], %37 {strides = array<i32>} : memref<1x1x128xf32, #tpu.memory_space<vmem>>, vector<1x1x128xf32>,
    %39 = arith.mulf %34, %34 : vector<16x128xf32>
    %cst_19 = arith.constant dense<0.000000e+00> : vector<128xf32>
    %40 = vector.multi_reduction <add>, %39, %cst_19 [0] : vector<16x128xf32> to vector<128xf32>
    %41 = vector.shape_cast %40 : vector<128xf32> to vector<1x128xf32>
    %42 = vector.shape_cast %41 : vector<1x128xf32> to vector<1x1x128xf32>
    %c0_20 = arith.constant 0 : index
    %c0_21 = arith.constant 0 : index
    %c0_22 = arith.constant 0 : index
    %43 = vector.load %arg7[%c0_20, %c0_21, %c0_22] : memref<1x1x128xf32, #tpu.memory_space<vmem>>, vector<1x1x128xf32>
    tpu.vector_store %arg7[%c0_20, %c0_21, %c0_22], %42 {strides = array<i32>} : memref<1x1x128xf32, #tpu.memory_space<vmem>>, vector<1x1x128xf32>,
    return
  }
  func.func @transform_0(%arg0: i32) -> (i32, i32) {
    %c0_i32 = arith.constant 0 : i32
    %c0_i32_0 = arith.constant 0 : i32
    return %arg0, %c0_i32 : i32, i32
  }
  func.func @transform_1(%arg0: i32) -> (i32, i32) {
    %c0_i32 = arith.constant 0 : i32
    %c0_i32_0 = arith.constant 0 : i32
    %c0_i32_1 = arith.constant 0 : i32
    return %c0_i32, %c0_i32_0 : i32, i32
  }
  func.func @transform_2(%arg0: i32) -> (i32, i32) {
    %c0_i32 = arith.constant 0 : i32
    %c0_i32_0 = arith.constant 0 : i32
    %c0_i32_1 = arith.constant 0 : i32
    return %c0_i32, %c0_i32_0 : i32, i32
  }
  func.func @transform_3(%arg0: i32) -> (i32, i32) {
    %c0_i32 = arith.constant 0 : i32
    %c0_i32_0 = arith.constant 0 : i32
    %c0_i32_1 = arith.constant 0 : i32
    return %c0_i32, %c0_i32_0 : i32, i32
  }
  func.func @transform_4(%arg0: i32) -> (i32, i32) {
    %c0_i32 = arith.constant 0 : i32
    %c0_i32_0 = arith.constant 0 : i32
    %c0_i32_1 = arith.constant 0 : i32
    return %c0_i32, %c0_i32_0 : i32, i32
  }
  func.func @transform_5(%arg0: i32) -> (i32, i32, i32) {
    %c0_i32 = arith.constant 0 : i32
    %c0_i32_0 = arith.constant 0 : i32
    %c0_i32_1 = arith.constant 0 : i32
    return %arg0, %c0_i32, %c0_i32_0 : i32, i32, i32
  }
  func.func @transform_6(%arg0: i32) -> (i32, i32, i32) {
    %c0_i32 = arith.constant 0 : i32
    %c0_i32_0 = arith.constant 0 : i32
    %c0_i32_1 = arith.constant 0 : i32
    return %arg0, %c0_i32, %c0_i32_0 : i32, i32, i32
  }
}

module attributes {stable_mosaic.version = 11 : i64} {
  func.func @_norm_kernel(%arg0: i32, %arg1: memref<16x32xf32, #tpu.memory_space<vmem>>, %arg2: memref<32x128xbf16, #tpu.memory_space<vmem>>, %arg3: memref<1x128xf32, #tpu.memory_space<vmem>>, %arg4: memref<128x128xbf16, #tpu.memory_space<vmem>>, %arg5: memref<1x128xf32, #tpu.memory_space<vmem>>, %arg6: memref<1x128xf32, #tpu.memory_space<vmem>>, %arg7: memref<1x128xf32, #tpu.memory_space<vmem>>, %arg8: memref<16x128xf32, #tpu.memory_space<vmem>>) attributes {dimension_semantics = [#tpu.dimension_semantics<parallel>], iteration_bounds = array<i64: 1>, scalar_prefetch = 0 : i64, scratch_operands = 0 : i64, tpu.core_type = #tpu.core_type<tc>, window_params = [{transform_indices = @transform_0, window_bounds = array<i64: 16, 32>}, {pipeline_mode = #tpu.pipeline_mode<synchronous>, transform_indices = @transform_1, window_bounds = array<i64: 32, 128>}, {pipeline_mode = #tpu.pipeline_mode<synchronous>, transform_indices = @transform_2, window_bounds = array<i64: 1, 128>}, {pipeline_mode = #tpu.pipeline_mode<synchronous>, transform_indices = @transform_3, window_bounds = array<i64: 128, 128>}, {pipeline_mode = #tpu.pipeline_mode<synchronous>, transform_indices = @transform_4, window_bounds = array<i64: 1, 128>}, {pipeline_mode = #tpu.pipeline_mode<synchronous>, transform_indices = @transform_5, window_bounds = array<i64: 1, 128>}, {pipeline_mode = #tpu.pipeline_mode<synchronous>, transform_indices = @transform_6, window_bounds = array<i64: 1, 128>}, {transform_indices = @transform_7, window_bounds = array<i64: 16, 128>}]} {
    %c0 = arith.constant 0 : index
    %c0_0 = arith.constant 0 : index
    %0 = vector.load %arg1[%c0, %c0_0] : memref<16x32xf32, #tpu.memory_space<vmem>>, vector<16x32xf32>
    %1 = arith.truncf %0 : vector<16x32xf32> to vector<16x32xbf16>
    %c0_1 = arith.constant 0 : index
    %c0_2 = arith.constant 0 : index
    %2 = vector.load %arg2[%c0_1, %c0_2] : memref<32x128xbf16, #tpu.memory_space<vmem>>, vector<32x128xbf16>
    %cst = arith.constant dense<0.000000e+00> : vector<16x128xf32>
    %3 = tpu.matmul %1, %2, %cst {dimension_numbers = #tpu.dot_dimension_numbers<[1], [0], [0], [1], [0, 0, 1, 1], [], []>} : vector<16x32xbf16>, vector<32x128xbf16>, vector<16x128xf32> -> vector<16x128xf32>
    %c0_3 = arith.constant 0 : index
    %c0_4 = arith.constant 0 : index
    %4 = vector.load %arg3[%c0_3, %c0_4] : memref<1x128xf32, #tpu.memory_space<vmem>>, vector<1x128xf32>
    %5 = vector.broadcast %4 : vector<1x128xf32> to vector<16x128xf32>
    %6 = arith.addf %3, %5 : vector<16x128xf32>
    %cst_5 = arith.constant 0.000000e+00 : f32
    %7 = vector.broadcast %cst_5 : f32 to vector<16x128xf32>
    %8 = arith.cmpf ogt, %6, %7 : vector<16x128xf32>
    %9 = math.exp %6 : vector<16x128xf32>
    %cst_6 = arith.constant 1.000000e+00 : f32
    %10 = vector.broadcast %cst_6 : f32 to vector<16x128xf32>
    %11 = arith.subf %9, %10 : vector<16x128xf32>
    %12 = arith.select %8, %6, %11 : vector<16x128xi1>, vector<16x128xf32>
    %13 = arith.truncf %12 : vector<16x128xf32> to vector<16x128xbf16>
    %c0_7 = arith.constant 0 : index
    %c0_8 = arith.constant 0 : index
    %14 = vector.load %arg4[%c0_7, %c0_8] : memref<128x128xbf16, #tpu.memory_space<vmem>>, vector<128x128xbf16>
    %cst_9 = arith.constant dense<0.000000e+00> : vector<16x128xf32>
    %15 = tpu.matmul %13, %14, %cst_9 {dimension_numbers = #tpu.dot_dimension_numbers<[1], [0], [0], [1], [0, 0, 1, 1], [], []>} : vector<16x128xbf16>, vector<128x128xbf16>, vector<16x128xf32> -> vector<16x128xf32>
    %c0_10 = arith.constant 0 : index
    %c0_11 = arith.constant 0 : index
    %16 = vector.load %arg5[%c0_10, %c0_11] : memref<1x128xf32, #tpu.memory_space<vmem>>, vector<1x128xf32>
    %17 = vector.broadcast %16 : vector<1x128xf32> to vector<16x128xf32>
    %18 = arith.addf %15, %17 : vector<16x128xf32>
    %cst_12 = arith.constant 0.000000e+00 : f32
    %19 = vector.broadcast %cst_12 : f32 to vector<16x128xf32>
    %20 = arith.cmpf ogt, %18, %19 : vector<16x128xf32>
    %21 = math.exp %18 : vector<16x128xf32>
    %cst_13 = arith.constant 1.000000e+00 : f32
    %22 = vector.broadcast %cst_13 : f32 to vector<16x128xf32>
    %23 = arith.subf %21, %22 : vector<16x128xf32>
    %24 = arith.select %20, %18, %23 : vector<16x128xi1>, vector<16x128xf32>
    %c0_14 = arith.constant 0 : index
    %c0_15 = arith.constant 0 : index
    %25 = vector.load %arg6[%c0_14, %c0_15] : memref<1x128xf32, #tpu.memory_space<vmem>>, vector<1x128xf32>
    %26 = vector.broadcast %25 : vector<1x128xf32> to vector<16x128xf32>
    %27 = arith.mulf %24, %26 : vector<16x128xf32>
    %c0_16 = arith.constant 0 : index
    %c0_17 = arith.constant 0 : index
    %28 = vector.load %arg7[%c0_16, %c0_17] : memref<1x128xf32, #tpu.memory_space<vmem>>, vector<1x128xf32>
    %29 = vector.broadcast %28 : vector<1x128xf32> to vector<16x128xf32>
    %30 = arith.addf %27, %29 : vector<16x128xf32>
    %c0_18 = arith.constant 0 : index
    %c0_19 = arith.constant 0 : index
    %31 = vector.load %arg8[%c0_18, %c0_19] : memref<16x128xf32, #tpu.memory_space<vmem>>, vector<16x128xf32>
    tpu.vector_store %arg8[%c0_18, %c0_19], %30 {strides = array<i32>} : memref<16x128xf32, #tpu.memory_space<vmem>>, vector<16x128xf32>,
    return
  }
  func.func @transform_0(%arg0: i32) -> (i32, i32) {
    %c0_i32 = arith.constant 0 : i32
    %c0_i32_0 = arith.constant 0 : i32
    return %arg0, %c0_i32 : i32, i32
  }
  func.func @transform_1(%arg0: i32) -> (i32, i32) {
    %c0_i32 = arith.constant 0 : i32
    %c0_i32_0 = arith.constant 0 : i32
    %c0_i32_1 = arith.constant 0 : i32
    return %c0_i32, %c0_i32_0 : i32, i32
  }
  func.func @transform_2(%arg0: i32) -> (i32, i32) {
    %c0_i32 = arith.constant 0 : i32
    %c0_i32_0 = arith.constant 0 : i32
    %c0_i32_1 = arith.constant 0 : i32
    return %c0_i32, %c0_i32_0 : i32, i32
  }
  func.func @transform_3(%arg0: i32) -> (i32, i32) {
    %c0_i32 = arith.constant 0 : i32
    %c0_i32_0 = arith.constant 0 : i32
    %c0_i32_1 = arith.constant 0 : i32
    return %c0_i32, %c0_i32_0 : i32, i32
  }
  func.func @transform_4(%arg0: i32) -> (i32, i32) {
    %c0_i32 = arith.constant 0 : i32
    %c0_i32_0 = arith.constant 0 : i32
    %c0_i32_1 = arith.constant 0 : i32
    return %c0_i32, %c0_i32_0 : i32, i32
  }
  func.func @transform_5(%arg0: i32) -> (i32, i32) {
    %c0_i32 = arith.constant 0 : i32
    %c0_i32_0 = arith.constant 0 : i32
    %c0_i32_1 = arith.constant 0 : i32
    return %c0_i32, %c0_i32_0 : i32, i32
  }
  func.func @transform_6(%arg0: i32) -> (i32, i32) {
    %c0_i32 = arith.constant 0 : i32
    %c0_i32_0 = arith.constant 0 : i32
    %c0_i32_1 = arith.constant 0 : i32
    return %c0_i32, %c0_i32_0 : i32, i32
  }
  func.func @transform_7(%arg0: i32) -> (i32, i32) {
    %c0_i32 = arith.constant 0 : i32
    %c0_i32_0 = arith.constant 0 : i32
    return %arg0, %c0_i32 : i32, i32
  }
}

</mosaic_0001>

<bundles_post_ra>
// kernel: mlp_forward.2
= control target key start
LH: loop header
LB: loop body
LE: loop exit
PB: predicated region body
PF: predicated region fallthrough
CT: control target
= control target key end

     0   :  { %v345_v0 = vmov 0.0   ;;  %vm346_vm0 = vmmov 0   ;;  %vm49_vm1 = vcmask 261120   ;;  %s430_s1 = inlined_call_operand.vmem [shape: bf16[32,128], index: 1, kind: input, shape index: {}]   ;;  %s431_s0 = inlined_call_operand.vmem [shape: f32[16,32], index: 0, kind: input, shape index: {}]   ;;  %s432_s3 = inlined_call_operand.vmem [shape: bf16[128,128], index: 3, kind: input, shape index: {}]   ;;  %s433_s2 = inlined_call_operand.vmem [shape: f32[1,128], index: 2, kind: input, shape index: {}]   ;;  %s434_s4 = inlined_call_operand.vmem [shape: f32[1,128], index: 4, kind: input, shape index: {}]   ;;  %s435_s5 = inlined_call_operand.vmem [shape: f32[1,1,128], index: 5, kind: output, shape index: {0}]   ;;  %s436_s6 = inlined_call_operand.vmem [shape: f32[1,1,128], index: 6, kind: output, shape index: {1}]  }
   0x1   :  { %297 = vmatprep.subr.bf16.mxu0 %v345_v0  ;;  %v327_v1 = vld [vmem:[%s430_s1 + $0x8] sm:$0xff]   ;;  %301 = vmatprep.mubr.msk.bf16.mxu0 %vm346_vm0, %v345_v0  ;;  %v328_v2 = vld [vmem:[%s430_s1] sm:$0xff]   ;;  %v329_v5 = vld [vmem:[%s432_s3 + $0x38] sm:$0xff]  }
   0x2   :  { %305 = vmatprep.subr.bf16.mxu1 %v345_v0  ;;  %321 = vmatprep.mubr.msk.bf16.mxu1 %vm346_vm0, %v345_v0  ;;  %v23_v3 = vld [vmem:[%s431_s0] sm:$0xff]  ;;  %v24_v4 = vld [vmem:[%s431_s0 + $0x8] sm:$0xff]  ;;  %v330_v7 = vld [vmem:[%s432_s3 + $0x30] sm:$0xff]  }
   0x3   :  { %298 = vmatpush3.bf16.msra.mxu0 %v327_v1  ;;  %v25_v6 = vpack.c.bf16 %v24_v4, %v23_v3  ;;  %306 = vmatpush3.bf16.msra.mxu1 %v329_v5  ;;  %v331_v8 = vld [vmem:[%s432_s3 + $0x28] sm:$0xff]   ;;  %v332_v9 = vld [vmem:[%s432_s3 + $0x20] sm:$0xff]   ;;  %v333_v10 = vld [vmem:[%s432_s3 + $0x18] sm:$0xff]  }
   0x4   :  { %299 = vmatprep.subr.bf16.mxu0 %v345_v0  ;;  %307 = vmatprep.subr.bf16.mxu1 %v345_v0  ;;  %v334_v11 = vld [vmem:[%s432_s3 + $0x10] sm:$0xff]   ;;  %v335_v12 = vld [vmem:[%s432_s3 + $0x8] sm:$0xff]   ;;  %v336_v13 = vld [vmem:[%s432_s3] sm:$0xff]  }
   0x5   :  { %v268_v14 = vld [vmem:[%s433_s2] ss:$0 sm:$0xff] }
   0x6   :  { %v274_v30 = vld [vmem:[%s434_s4] ss:$0 sm:$0xff] }
   0x7   :  { %300 = vmatpush3.bf16.msra.mxu0 %v328_v2  ;;  %308 = vmatpush3.bf16.msra.mxu1 %v330_v7 }
   0x8   :  { %309 = vmatprep.subr.bf16.mxu1 %v345_v0 }
   0xa   :  { %302 = vmatmul.mubr.msk.bf16.vlgmr.msra.gmra.mxu0 %vm49_vm1, %v25_v6 }
   0xb   :  { %310 = vmatpush3.bf16.msra.mxu1 %v331_v8 }
   0xc   :  { %311 = vmatprep.subr.bf16.mxu1 %v345_v0 }
   0xf   :  { %312 = vmatpush3.bf16.msra.mxu1 %v332_v9 }
  0x10   :  { %313 = vmatprep.subr.bf16.mxu1 %v345_v0 }
  0x13   :  { %314 = vmatpush3.bf16.msra.mxu1 %v333_v10 }
  0x14   :  { %315 = vmatprep.subr.bf16.mxu1 %v345_v0 }
  0x17   :  { %316 = vmatpush3.bf16.msra.mxu1 %v334_v11 }
  0x18   :  { %317 = vmatprep.subr.bf16.mxu1 %v345_v0 }
  0x1b   :  { %318 = vmatpush3.bf16.msra.mxu1 %v335_v12 }
  0x1c   :  { %319 = vmatprep.subr.bf16.mxu1 %v345_v0 }
  0x1f   :  { %320 = vmatpush3.bf16.msra.mxu1 %v336_v13 }
  0xca   :  { %v87_v15 = vpop.f32.mrf.mxu0 }
  0xcb   :  { %v88_v16 = vadd.f32 %v268_v14, %v87_v15 }
  0xcc   :  { %v303_v17 = vpop.f32.mrf.mxu0 }
  0xcd   :  { %v96_v18 = vmul.f32 1.442695, %v88_v16  ;;  %vm94_vm2 = vcmp.gt.f32.partialorder %v88_v16, 0.0 }
  0xce   :  { %v90_v19 = vpop.f32.mrf.mxu0 }
  0xcf   :  { %337 = vpow2.f32 %v96_v18  ;;  %v91_v20 = vadd.f32 %v268_v14, %v90_v19 }
  0xd0   :  { %v304_v21 = vpop.f32.mrf.mxu0 }
  0xd1   :  { %v98_v22 = vmul.f32 1.442695, %v91_v20  ;;  %vm95_vm3 = vcmp.gt.f32.partialorder %v91_v20, 0.0 }
  0xd3   :  { %339 = vpow2.f32 %v98_v22 }
  0xdc   :  { %v338_v23 = vpop.eup %337 }
  0xdd   :  { %v272_v24 = vadd.f32 -1.0, %v338_v23 }
  0xdf   :  { %v102_v27 = vsel %vm94_vm2, %v88_v16, %v272_v24 }
  0xe0   :  { %v340_v25 = vpop.eup %339 }
  0xe1   :  { %v273_v26 = vadd.f32 -1.0, %v340_v25 }
  0xe3   :  { %v103_v28 = vsel %vm95_vm3, %v91_v20, %v273_v26 }
  0xe4   :  { %v104_v29 = vpack.c.bf16 %v103_v28, %v102_v27 }
  0xe6   :  { %322 = vmatmul.mubr.bf16.vlgmr.msra.gmra.mxu1 %v104_v29 }
 0x1a6   :  { %v210_v31 = vpop.f32.mrf.mxu1 }
 0x1a7   :  { %v211_v32 = vadd.f32 %v274_v30, %v210_v31 }
 0x1a8   :  { %v323_v33 = vpop.f32.mrf.mxu1 }
 0x1a9   :  { %v219_v34 = vmul.f32 1.442695, %v211_v32  ;;  %vm217_vm4 = vcmp.gt.f32.partialorder %v211_v32, 0.0 }
 0x1aa   :  { %v213_v35 = vpop.f32.mrf.mxu1 }
 0x1ab   :  { %341 = vpow2.f32 %v219_v34  ;;  %v214_v36 = vadd.f32 %v274_v30, %v213_v35 }
 0x1ac   :  { %v324_v37 = vpop.f32.mrf.mxu1 }
 0x1ad   :  { %v221_v38 = vmul.f32 1.442695, %v214_v36  ;;  %vm218_vm5 = vcmp.gt.f32.partialorder %v214_v36, 0.0 }
 0x1af   :  { %343 = vpow2.f32 %v221_v38 }
 0x1b8   :  { %v342_v39 = vpop.eup %341 }
 0x1b9   :  { %v283_v40 = vadd.f32 -1.0, %v342_v39 }
 0x1bb   :  { %v225_v42 = vsel %vm217_vm4, %v211_v32, %v283_v40 }
 0x1bc   :  { %v344_v41 = vpop.eup %343  ;;  %v250_v45 = vmul.f32 %v225_v42, %v225_v42 }
 0x1bd   :  { %v284_v43 = vadd.f32 -1.0, %v344_v41 }
 0x1bf   :  { %v226_v44 = vsel %vm218_vm5, %v214_v36, %v284_v43 }
 0x1c0   :  { %v242_v46 = vadd.f32 %v226_v44, %v225_v42  ;;  %v251_v47 = vmul.f32 %v226_v44, %v226_v44 }
 0x1c2   :  { %v243_v48 = vrot.slane %v242_v46, 4  ;;  %v252_v49 = vadd.f32 %v251_v47, %v250_v45 }
 0x1c4   :  { %v244_v50 = vadd.f32 %v243_v48, %v242_v46  ;;  %v253_v51 = vrot.slane %v252_v49, 4 }
 0x1c6   :  { %v245_v52 = vrot.slane %v244_v50, 2  ;;  %v254_v53 = vadd.f32 %v253_v51, %v252_v49 }
 0x1c8   :  { %v246_v54 = vadd.f32 %v245_v52, %v244_v50  ;;  %v255_v55 = vrot.slane %v254_v53, 2 }
 0x1ca   :  { %v247_v56 = vrot.slane %v246_v54, 1  ;;  %v256_v57 = vadd.f32 %v255_v55, %v254_v53 }
 0x1cc   :  { %v248_v58 = vadd.f32 %v247_v56, %v246_v54  ;;  %v257_v59 = vrot.slane %v256_v57, 1 }
 0x1ce   :  { %249 = vst [vmem:[%s435_s5] sm:$0x1] %v248_v58  ;;  %v258_v60 = vadd.f32 %v257_v59, %v256_v57 }
 0x1d0   :  { %259 = vst [vmem:[%s436_s6] sm:$0x1] %v258_v60 }

// kernel: mlp_forward.3
= control target key start
LH: loop header
LB: loop body
LE: loop exit
PB: predicated region body
PF: predicated region fallthrough
CT: control target
= control target key end

     0   :  { %v334_v0 = vmov 0.0   ;;  %vm335_vm0 = vmmov 0   ;;  %vm53_vm1 = vcmask 261120   ;;  %s430_s1 = inlined_call_operand.vmem [shape: bf16[32,128], index: 1, kind: input, shape index: {}]   ;;  %s431_s0 = inlined_call_operand.vmem [shape: f32[16,32], index: 0, kind: input, shape index: {}]   ;;  %s432_s3 = inlined_call_operand.vmem [shape: bf16[128,128], index: 3, kind: input, shape index: {}]   ;;  %s433_s2 = inlined_call_operand.vmem [shape: f32[1,128], index: 2, kind: input, shape index: {}]   ;;  %s434_s4 = inlined_call_operand.vmem [shape: f32[1,128], index: 4, kind: input, shape index: {}]   ;;  %s435_s5 = inlined_call_operand.vmem [shape: f32[1,128], index: 5, kind: input, shape index: {}]   ;;  %s436_s6 = inlined_call_operand.vmem [shape: f32[1,128], index: 6, kind: input, shape index: {}]   ;;  %s437_s7 = inlined_call_operand.vmem [shape: f32[16,128], index: 7, kind: output, shape index: {}]  }
   0x1   :  { %286 = vmatprep.subr.bf16.mxu0 %v334_v0  ;;  %v316_v1 = vld [vmem:[%s430_s1 + $0x8] sm:$0xff]   ;;  %290 = vmatprep.mubr.msk.bf16.mxu0 %vm335_vm0, %v334_v0  ;;  %v317_v2 = vld [vmem:[%s430_s1] sm:$0xff]   ;;  %v318_v5 = vld [vmem:[%s432_s3 + $0x38] sm:$0xff]  }
   0x2   :  { %294 = vmatprep.subr.bf16.mxu1 %v334_v0  ;;  %310 = vmatprep.mubr.msk.bf16.mxu1 %vm335_vm0, %v334_v0  ;;  %v27_v3 = vld [vmem:[%s431_s0] sm:$0xff]  ;;  %v28_v4 = vld [vmem:[%s431_s0 + $0x8] sm:$0xff]  ;;  %v319_v7 = vld [vmem:[%s432_s3 + $0x30] sm:$0xff]  }
   0x3   :  { %287 = vmatpush3.bf16.msra.mxu0 %v316_v1  ;;  %v29_v6 = vpack.c.bf16 %v28_v4, %v27_v3  ;;  %295 = vmatpush3.bf16.msra.mxu1 %v318_v5  ;;  %v320_v8 = vld [vmem:[%s432_s3 + $0x28] sm:$0xff]   ;;  %v321_v9 = vld [vmem:[%s432_s3 + $0x20] sm:$0xff]   ;;  %v322_v10 = vld [vmem:[%s432_s3 + $0x18] sm:$0xff]  }
   0x4   :  { %288 = vmatprep.subr.bf16.mxu0 %v334_v0  ;;  %296 = vmatprep.subr.bf16.mxu1 %v334_v0  ;;  %v323_v11 = vld [vmem:[%s432_s3 + $0x10] sm:$0xff]   ;;  %v324_v12 = vld [vmem:[%s432_s3 + $0x8] sm:$0xff]   ;;  %v325_v13 = vld [vmem:[%s432_s3] sm:$0xff]  }
   0x5   :  { %v255_v14 = vld [vmem:[%s433_s2] ss:$0 sm:$0xff] }
   0x6   :  { %v261_v30 = vld [vmem:[%s434_s4] ss:$0 sm:$0xff] }
   0x7   :  { %289 = vmatpush3.bf16.msra.mxu0 %v317_v2  ;;  %297 = vmatpush3.bf16.msra.mxu1 %v319_v7  ;;  %v272_v41 = vld [vmem:[%s435_s5] ss:$0 sm:$0xff] }
   0x8   :  { %298 = vmatprep.subr.bf16.mxu1 %v334_v0  ;;  %v273_v43 = vld [vmem:[%s436_s6] ss:$0 sm:$0xff] }
   0xa   :  { %291 = vmatmul.mubr.msk.bf16.vlgmr.msra.gmra.mxu0 %vm53_vm1, %v29_v6 }
   0xb   :  { %299 = vmatpush3.bf16.msra.mxu1 %v320_v8 }
   0xc   :  { %300 = vmatprep.subr.bf16.mxu1 %v334_v0 }
   0xf   :  { %301 = vmatpush3.bf16.msra.mxu1 %v321_v9 }
  0x10   :  { %302 = vmatprep.subr.bf16.mxu1 %v334_v0 }
  0x13   :  { %303 = vmatpush3.bf16.msra.mxu1 %v322_v10 }
  0x14   :  { %304 = vmatprep.subr.bf16.mxu1 %v334_v0 }
  0x17   :  { %305 = vmatpush3.bf16.msra.mxu1 %v323_v11 }
  0x18   :  { %306 = vmatprep.subr.bf16.mxu1 %v334_v0 }
  0x1b   :  { %307 = vmatpush3.bf16.msra.mxu1 %v324_v12 }
  0x1c   :  { %308 = vmatprep.subr.bf16.mxu1 %v334_v0 }
  0x1f   :  { %309 = vmatpush3.bf16.msra.mxu1 %v325_v13 }
  0xca   :  { %v91_v15 = vpop.f32.mrf.mxu0 }
  0xcb   :  { %v92_v16 = vadd.f32 %v255_v14, %v91_v15 }
  0xcc   :  { %v292_v17 = vpop.f32.mrf.mxu0 }
  0xcd   :  { %v100_v18 = vmul.f32 1.442695, %v92_v16  ;;  %vm98_vm2 = vcmp.gt.f32.partialorder %v92_v16, 0.0 }
  0xce   :  { %v94_v19 = vpop.f32.mrf.mxu0 }
  0xcf   :  { %326 = vpow2.f32 %v100_v18  ;;  %v95_v20 = vadd.f32 %v255_v14, %v94_v19 }
  0xd0   :  { %v293_v21 = vpop.f32.mrf.mxu0 }
  0xd1   :  { %v102_v22 = vmul.f32 1.442695, %v95_v20  ;;  %vm99_vm3 = vcmp.gt.f32.partialorder %v95_v20, 0.0 }
  0xd3   :  { %328 = vpow2.f32 %v102_v22 }
  0xdc   :  { %v327_v23 = vpop.eup %326 }
  0xdd   :  { %v259_v24 = vadd.f32 -1.0, %v327_v23 }
  0xdf   :  { %v106_v27 = vsel %vm98_vm2, %v92_v16, %v259_v24 }
  0xe0   :  { %v329_v25 = vpop.eup %328 }
  0xe1   :  { %v260_v26 = vadd.f32 -1.0, %v329_v25 }
  0xe3   :  { %v107_v28 = vsel %vm99_vm3, %v95_v20, %v260_v26 }
  0xe4   :  { %v108_v29 = vpack.c.bf16 %v107_v28, %v106_v27 }
  0xe6   :  { %311 = vmatmul.mubr.bf16.vlgmr.msra.gmra.mxu1 %v108_v29 }
 0x1a6   :  { %v214_v31 = vpop.f32.mrf.mxu1 }
 0x1a7   :  { %v215_v32 = vadd.f32 %v261_v30, %v214_v31 }
 0x1a8   :  { %v312_v33 = vpop.f32.mrf.mxu1 }
 0x1a9   :  { %v223_v34 = vmul.f32 1.442695, %v215_v32  ;;  %vm221_vm4 = vcmp.gt.f32.partialorder %v215_v32, 0.0 }
 0x1aa   :  { %v217_v35 = vpop.f32.mrf.mxu1 }
 0x1ab   :  { %330 = vpow2.f32 %v223_v34  ;;  %v218_v36 = vadd.f32 %v261_v30, %v217_v35 }
 0x1ac   :  { %v313_v37 = vpop.f32.mrf.mxu1 }
 0x1ad   :  { %v225_v38 = vmul.f32 1.442695, %v218_v36  ;;  %vm222_vm5 = vcmp.gt.f32.partialorder %v218_v36, 0.0 }
 0x1af   :  { %332 = vpow2.f32 %v225_v38 }
 0x1b8   :  { %v331_v39 = vpop.eup %330 }
 0x1b9   :  { %v270_v40 = vadd.f32 -1.0, %v331_v39 }
 0x1bb   :  { %v229_v42 = vsel %vm221_vm4, %v215_v32, %v270_v40 }
 0x1bc   :  { %v333_v44 = vpop.eup %332  ;;  %v238_v45 = vmul.f32 %v272_v41, %v229_v42 }
 0x1bd   :  { %v271_v46 = vadd.f32 -1.0, %v333_v44 }
 0x1be   :  { %v247_v47 = vadd.f32 %v273_v43, %v238_v45 }
 0x1bf   :  { %v230_v48 = vsel %vm222_vm5, %v218_v36, %v271_v46 }
 0x1c0   :  { %249 = vst [vmem:[%s437_s7] sm:$0xff] %v247_v47  ;;  %v239_v49 = vmul.f32 %v272_v41, %v230_v48 }
 0x1c2   :  { %v248_v50 = vadd.f32 %v273_v43, %v239_v49 }
 0x1c4   :  { %250 = vst [vmem:[%s437_s7 + $0x8] sm:$0xff] %v248_v50 }

</bundles_post_ra>
